<compile_context>
chip_gen: v5e
topology: v5e:2x2
jax: 0.10.0
libtpu: 0.0.40
codegen_flags: <defaults>
</compile_context>

<pallas_src>
import functools
import math

import jax
import jax.numpy as jnp
from jax import lax
from jax.experimental import pallas as pl
from jax.experimental.pallas import tpu as pltpu


# ---------------------------------------------------------------------------
# small helpers (kernel side)
# ---------------------------------------------------------------------------
def _nt(a, b):
    # (M, K) x (N, K) -> (M, N): contract last dims of both.
    return lax.dot_general(a, b, (((1,), (1,)), ((), ())),
                           preferred_element_type=jnp.float32)


def _nn(a, b):
    # (M, K) x (K, N) -> (M, N)
    return lax.dot_general(a, b, (((1,), (0,)), ((), ())),
                           preferred_element_type=jnp.float32)


def _gram(a):
    # (C, T) -> (T, T): g[j, k] = sum_c a[c, j] * a[c, k]
    return lax.dot_general(a, a, (((0,), (0,)), ((), ())),
                           preferred_element_type=jnp.float32)


def _softmax_lastdim(s):
    m = jnp.max(s, axis=-1, keepdims=True)
    e = jnp.exp(s - m)
    return e / jnp.sum(e, axis=-1, keepdims=True)   # exact: rows are tiny


# ---------------------------------------------------------------------------
# kernel
# ---------------------------------------------------------------------------
def _self_transformer4_kernel(x_ref, e1t_ref, e2t_ref, o_ref,
                              a_scr, mh_scr, y1_scr, y2_scr,
                              *, c, h, w, nb):
    inv_c_sqrt = 1.0 / math.sqrt(float(c))
    inv_w = 1.0 / float(w)
    inv_h = 1.0 / float(h)

    e1t = e1t_ref[...]            # (H, H*W): e1t[r, k] = 1 iff k // W == r
    e2t = e2t_ref[...]            # (W, H*W): e2t[r, k] = 1 iff k %  W == r

    # --- batched over all images in the block (MXU M dim = nb*C) ----------
    x = x_ref[...].astype(jnp.float32)            # (nb*C, H*W)
    a_scr[...] = _nt(x, e1t) * inv_w              # per-image mean over W -> (nb*C, H)
    mh_scr[...] = _nt(x, e2t) * inv_h             # per-image mean over H -> (nb*C, W)

    # --- tiny per-image attention (scores are only (H,H)/(W,W)) -----------
    def per_image(i):
        rows = pl.ds(i * c, c)
        # stage 1: attention over the H tokens (features = C)
        a = a_scr[rows, :]                                    # (C, H)
        p1 = _softmax_lastdim(_gram(a) * inv_c_sqrt)          # (H, H)
        y1 = _nt(a, p1)                                       # (C, H)
        y1_scr[rows, :] = y1
        # stage 2 on the updated image:
        # mean_H((x + bcast_W(y1)) / 2) == 0.5 * (mean_H(x) + mean_H(y1))
        b = 0.5 * (mh_scr[rows, :] + jnp.mean(y1, axis=1, keepdims=True))
        p2 = _softmax_lastdim(_gram(b) * inv_c_sqrt)          # (W, W)
        y2_scr[rows, :] = _nt(b, p2)                          # (C, W)

    if nb <= 8:
        for i in range(nb):        # static offsets; results land in scratch,
            per_image(i)           # so live ranges stay bounded
    else:
        def body(i, carry):
            per_image(i)
            return carry
        lax.fori_loop(0, nb, body, 0, unroll=2)

    # --- broadcast back with two batched NN matmuls, fuse both residuals --
    y1_b = _nn(y1_scr[...], e1t)                  # (nb*C, H*W) bcast over W
    y2_b = _nn(y2_scr[...], e2t)                  # (nb*C, H*W) bcast over H
    o_ref[...] = (0.25 * x_ref[...].astype(jnp.float32)
                  + 0.25 * y1_b + 0.5 * y2_b).astype(o_ref.dtype)


# ---------------------------------------------------------------------------
# wrapper
# ---------------------------------------------------------------------------
def _pick_block_images(n, c, hw, itemsize, *, target_bytes=4 << 20,
                       min_block_bytes=1 << 20, want_steps=4):
    """Images per block: nb divides n, nb*c is sublane-aligned (or the whole
    batch), block stays under target_bytes; prefer >= want_steps grid steps
    (feeds both v7x TensorCores / keeps the pipeline busy) but never shrink
    blocks below min_block_bytes just to add steps."""
    def block_bytes(nb):
        rows_pad = -(-(nb * c) // 8) * 8          # account sublane padding
        return rows_pad * hw * itemsize

    cands = [d for d in range(1, n + 1)
             if n % d == 0 and ((d * c) % 8 == 0 or d == n)]
    fitting = [d for d in cands if block_bytes(d) <= target_bytes]
    if not fitting:
        return min(cands)
    nb = max(fitting)
    for d in sorted(fitting, reverse=True):
        if n // d >= want_steps and block_bytes(d) >= min_block_bytes:
            nb = d
            break
    return nb


def self_transformer4_pallas(x):
    n, c, h, w = x.shape
    hw = h * w
    itemsize = jnp.dtype(x.dtype).itemsize

    nb = _pick_block_images(n, c, hw, itemsize)
    n_steps = n // nb
    rows = nb * c
    block_bytes = -(-rows // 8) * 8 * hw * itemsize

    # Constant 0/1 selection matrices (hoisted out of the grid loop; exact
    # integer construction, no in-kernel f32 div/mod tricks).
    k_idx = jnp.arange(hw, dtype=jnp.int32)
    e1t = (k_idx[None, :] // w ==
           jnp.arange(h, dtype=jnp.int32)[:, None]).astype(jnp.float32)   # (H, HW)
    e2t = (k_idx[None, :] % w ==
           jnp.arange(w, dtype=jnp.int32)[:, None]).astype(jnp.float32)   # (W, HW)

    # VMEM budget: double-buffered in+out blocks + resident constants + tiny
    # scratch, capped at 48 MiB so v7x's 64 MiB physical VMEM keeps headroom.
    try:
        vmem_cap = int(pltpu.get_tpu_info().vmem_capacity_bytes)
    except Exception:
        vmem_cap = 64 << 20
    vmem_cap_budget = max(32 << 20, vmem_cap - (16 << 20))
    vmem_limit = int(min(max(32 << 20, 4 * block_bytes + (16 << 20)),
                         vmem_cap_budget))

    x_flat = x.reshape(n * c, hw)     # row-major metadata reshape; lane-dense

    # Deepen input buffering only when blocks are small and there are enough
    # grid steps for it to matter.
    if block_bytes < (1 << 20) and n_steps >= 3:
        x_spec = pl.BlockSpec((rows, hw), lambda i: (i, 0),
                              pipeline_mode=pl.Buffered(3))
    else:
        x_spec = pl.BlockSpec((rows, hw), lambda i: (i, 0))

    kernel = functools.partial(_self_transformer4_kernel, c=c, h=h, w=w, nb=nb)
    out = pl.pallas_call(
        kernel,
        out_shape=jax.ShapeDtypeStruct((n * c, hw), x.dtype),
        grid_spec=pltpu.PrefetchScalarGridSpec(
            num_scalar_prefetch=0,
            grid=(n_steps,),
            in_specs=[
                x_spec,
                pl.BlockSpec((h, hw), lambda i: (0, 0)),   # resident constant
                pl.BlockSpec((w, hw), lambda i: (0, 0)),   # resident constant
            ],
            out_specs=pl.BlockSpec((rows, hw), lambda i: (i, 0)),
            scratch_shapes=[
                pltpu.VMEM((rows, h), jnp.float32),   # A_ch: mean over W
                pltpu.VMEM((rows, w), jnp.float32),   # mean over H of x
                pltpu.VMEM((rows, h), jnp.float32),   # Y1 (stage-1 values)
                pltpu.VMEM((rows, w), jnp.float32),   # Y2 (stage-2 values)
            ],
        ),
        compiler_params=pltpu.CompilerParams(
            dimension_semantics=("parallel",),
            vmem_limit_bytes=vmem_limit,
        ),
    )(x_flat, e1t, e2t)
    return out.reshape(n, c, h, w)


# ---------------------------------------------------------------------------
# pure-JAX reference (mirrors the PyTorch module) for verification
# ---------------------------------------------------------------------------
def self_transformer4_ref(x):
    n, c, h, w = x.shape
    inv_sqrt_c = 1.0 / math.sqrt(float(c))

    x1 = jnp.mean(x, axis=3).transpose(0, 2, 1)             # (n, h, c)
    s1 = jnp.einsum("nhc,nkc->nhk", x1, x1) * inv_sqrt_c
    p1 = jax.nn.softmax(s1, axis=-1)
    y1 = jnp.einsum("nhk,nkc->nhc", p1, x1)
    y1 = y1.transpose(0, 2, 1).reshape(n, c, h, 1)
    x = (x + y1) / 2

    x2 = jnp.mean(x, axis=2).transpose(0, 2, 1)             # (n, w, c)
    s2 = jnp.einsum("nwc,nkc->nwk", x2, x2) * inv_sqrt_c
    p2 = jax.nn.softmax(s2, axis=-1)
    y2 = jnp.einsum("nwk,nkc->nwc", p2, x2)
    y2 = y2.transpose(0, 2, 1).reshape(n, c, 1, w)
    x = (x + y2) / 2
    return x


if __name__ == "__main__":
    key = jax.random.PRNGKey(0)
    n, c, h, w = 2, 4, 16, 16
    x = jax.random.normal(key, (n, c, h, w), dtype=jnp.float32)

    out = jax.block_until_ready(self_transformer4_pallas(x))
    ref = jax.block_until_ready(self_transformer4_ref(x))

    assert out.shape == (n, c, h, w)
    assert jnp.allclose(out, ref, atol=1e-4, rtol=1e-4), (
        "Pallas output does not match JAX reference")

    print("KERNEL_OK")
</pallas_src>

<mosaic_0001>
module attributes {stable_mosaic.version = 11 : i64} {
  func.func @_self_transformer4_kernel(%arg0: i32, %arg1: memref<8x256xf32, #tpu.memory_space<vmem>>, %arg2: memref<16x256xf32, #tpu.memory_space<vmem>>, %arg3: memref<16x256xf32, #tpu.memory_space<vmem>>, %arg4: memref<8x256xf32, #tpu.memory_space<vmem>>, %arg5: memref<8x16xf32, #tpu.memory_space<vmem>>, %arg6: memref<8x16xf32, #tpu.memory_space<vmem>>, %arg7: memref<8x16xf32, #tpu.memory_space<vmem>>, %arg8: memref<8x16xf32, #tpu.memory_space<vmem>>) attributes {dimension_semantics = [#tpu.dimension_semantics<parallel>], iteration_bounds = array<i64: 1>, scalar_prefetch = 0 : i64, scratch_operands = 4 : i64, tpu.core_type = #tpu.core_type<tc>, window_params = [{transform_indices = @transform_0, window_bounds = array<i64: 8, 256>}, {pipeline_mode = #tpu.pipeline_mode<synchronous>, transform_indices = @transform_1, window_bounds = array<i64: 16, 256>}, {pipeline_mode = #tpu.pipeline_mode<synchronous>, transform_indices = @transform_2, window_bounds = array<i64: 16, 256>}, {transform_indices = @transform_3, window_bounds = array<i64: 8, 256>}]} {
    %c0 = arith.constant 0 : index
    %c0_0 = arith.constant 0 : index
    %0 = vector.load %arg2[%c0, %c0_0] : memref<16x256xf32, #tpu.memory_space<vmem>>, vector<16x256xf32>
    %c0_1 = arith.constant 0 : index
    %c0_2 = arith.constant 0 : index
    %1 = vector.load %arg3[%c0_1, %c0_2] : memref<16x256xf32, #tpu.memory_space<vmem>>, vector<16x256xf32>
    %c0_3 = arith.constant 0 : index
    %c0_4 = arith.constant 0 : index
    %2 = vector.load %arg1[%c0_3, %c0_4] : memref<8x256xf32, #tpu.memory_space<vmem>>, vector<8x256xf32>
    %cst = arith.constant dense<0.000000e+00> : vector<8x16xf32>
    %3 = tpu.matmul %2, %0, %cst {dimension_numbers = #tpu.dot_dimension_numbers<[1], [1], [0], [0], [0, 0, 1, 0], [], []>} : vector<8x256xf32>, vector<16x256xf32>, vector<8x16xf32> -> vector<8x16xf32>
    %cst_5 = arith.constant 6.250000e-02 : f32
    %4 = vector.broadcast %cst_5 : f32 to vector<8x16xf32>
    %5 = arith.mulf %3, %4 : vector<8x16xf32>
    %c0_6 = arith.constant 0 : index
    %c0_7 = arith.constant 0 : index
    %6 = vector.load %arg5[%c0_6, %c0_7] : memref<8x16xf32, #tpu.memory_space<vmem>>, vector<8x16xf32>
    tpu.vector_store %arg5[%c0_6, %c0_7], %5 {strides = array<i32>} : memref<8x16xf32, #tpu.memory_space<vmem>>, vector<8x16xf32>,
    %cst_8 = arith.constant dense<0.000000e+00> : vector<8x16xf32>
    %7 = tpu.matmul %2, %1, %cst_8 {dimension_numbers = #tpu.dot_dimension_numbers<[1], [1], [0], [0], [0, 0, 1, 0], [], []>} : vector<8x256xf32>, vector<16x256xf32>, vector<8x16xf32> -> vector<8x16xf32>
    %cst_9 = arith.constant 6.250000e-02 : f32
    %8 = vector.broadcast %cst_9 : f32 to vector<8x16xf32>
    %9 = arith.mulf %7, %8 : vector<8x16xf32>
    %c0_10 = arith.constant 0 : index
    %c0_11 = arith.constant 0 : index
    %10 = vector.load %arg6[%c0_10, %c0_11] : memref<8x16xf32, #tpu.memory_space<vmem>>, vector<8x16xf32>
    tpu.vector_store %arg6[%c0_10, %c0_11], %9 {strides = array<i32>} : memref<8x16xf32, #tpu.memory_space<vmem>>, vector<8x16xf32>,
    %c0_12 = arith.constant 0 : index
    %c0_13 = arith.constant 0 : index
    %11 = vector.load %arg5[%c0_12, %c0_13] : memref<8x16xf32, #tpu.memory_space<vmem>>, vector<4x16xf32>
    %cst_14 = arith.constant dense<0.000000e+00> : vector<16x16xf32>
    %12 = tpu.matmul %11, %11, %cst_14 {dimension_numbers = #tpu.dot_dimension_numbers<[0], [0], [1], [1], [0, 1, 1, 1], [], []>} : vector<4x16xf32>, vector<4x16xf32>, vector<16x16xf32> -> vector<16x16xf32>
    %cst_15 = arith.constant 5.000000e-01 : f32
    %13 = vector.broadcast %cst_15 : f32 to vector<16x16xf32>
    %14 = arith.mulf %12, %13 : vector<16x16xf32>
    %cst_16 = arith.constant dense<0xFF800000> : vector<16xf32>
    %15 = vector.multi_reduction <maximumf>, %14, %cst_16 [1] : vector<16x16xf32> to vector<16xf32>
    %16 = vector.shape_cast %15 : vector<16xf32> to vector<16x1xf32>
    %17 = vector.broadcast %16 : vector<16x1xf32> to vector<16x16xf32>
    %18 = arith.subf %14, %17 : vector<16x16xf32>
    %19 = math.exp %18 : vector<16x16xf32>
    %cst_17 = arith.constant dense<0.000000e+00> : vector<16xf32>
    %20 = vector.multi_reduction <add>, %19, %cst_17 [1] : vector<16x16xf32> to vector<16xf32>
    %21 = vector.shape_cast %20 : vector<16xf32> to vector<16x1xf32>
    %22 = vector.broadcast %21 : vector<16x1xf32> to vector<16x16xf32>
    %23 = arith.divf %19, %22 : vector<16x16xf32>
    %cst_18 = arith.constant dense<0.000000e+00> : vector<4x16xf32>
    %24 = tpu.matmul %11, %23, %cst_18 {dimension_numbers = #tpu.dot_dimension_numbers<[1], [1], [0], [0], [0, 0, 1, 0], [], []>} : vector<4x16xf32>, vector<16x16xf32>, vector<4x16xf32> -> vector<4x16xf32>
    %c0_19 = arith.constant 0 : index
    %c0_20 = arith.constant 0 : index
    %25 = vector.load %arg7[%c0_19, %c0_20] : memref<8x16xf32, #tpu.memory_space<vmem>>, vector<4x16xf32>
    tpu.vector_store %arg7[%c0_19, %c0_20], %24 {strides = array<i32>} : memref<8x16xf32, #tpu.memory_space<vmem>>, vector<4x16xf32>,
    %c0_21 = arith.constant 0 : index
    %c0_22 = arith.constant 0 : index
    %26 = vector.load %arg6[%c0_21, %c0_22] : memref<8x16xf32, #tpu.memory_space<vmem>>, vector<4x16xf32>
    %cst_23 = arith.constant dense<0.000000e+00> : vector<4xf32>
    %27 = vector.multi_reduction <add>, %24, %cst_23 [1] : vector<4x16xf32> to vector<4xf32>
    %28 = vector.shape_cast %27 : vector<4xf32> to vector<4x1xf32>
    %cst_24 = arith.constant 1.600000e+01 : f32
    %29 = vector.broadcast %cst_24 : f32 to vector<4x1xf32>
    %30 = arith.divf %28, %29 : vector<4x1xf32>
    %31 = vector.broadcast %30 : vector<4x1xf32> to vector<4x16xf32>
    %32 = arith.addf %26, %31 : vector<4x16xf32>
    %cst_25 = arith.constant 5.000000e-01 : f32
    %33 = vector.broadcast %cst_25 : f32 to vector<4x16xf32>
    %34 = arith.mulf %33, %32 : vector<4x16xf32>
    %cst_26 = arith.constant dense<0.000000e+00> : vector<16x16xf32>
    %35 = tpu.matmul %34, %34, %cst_26 {dimension_numbers = #tpu.dot_dimension_numbers<[0], [0], [1], [1], [0, 1, 1, 1], [], []>} : vector<4x16xf32>, vector<4x16xf32>, vector<16x16xf32> -> vector<16x16xf32>
    %cst_27 = arith.constant 5.000000e-01 : f32
    %36 = vector.broadcast %cst_27 : f32 to vector<16x16xf32>
    %37 = arith.mulf %35, %36 : vector<16x16xf32>
    %cst_28 = arith.constant dense<0xFF800000> : vector<16xf32>
    %38 = vector.multi_reduction <maximumf>, %37, %cst_28 [1] : vector<16x16xf32> to vector<16xf32>
    %39 = vector.shape_cast %38 : vector<16xf32> to vector<16x1xf32>
    %40 = vector.broadcast %39 : vector<16x1xf32> to vector<16x16xf32>
    %41 = arith.subf %37, %40 : vector<16x16xf32>
    %42 = math.exp %41 : vector<16x16xf32>
    %cst_29 = arith.constant dense<0.000000e+00> : vector<16xf32>
    %43 = vector.multi_reduction <add>, %42, %cst_29 [1] : vector<16x16xf32> to vector<16xf32>
    %44 = vector.shape_cast %43 : vector<16xf32> to vector<16x1xf32>
    %45 = vector.broadcast %44 : vector<16x1xf32> to vector<16x16xf32>
    %46 = arith.divf %42, %45 : vector<16x16xf32>
    %cst_30 = arith.constant dense<0.000000e+00> : vector<4x16xf32>
    %47 = tpu.matmul %34, %46, %cst_30 {dimension_numbers = #tpu.dot_dimension_numbers<[1], [1], [0], [0], [0, 0, 1, 0], [], []>} : vector<4x16xf32>, vector<16x16xf32>, vector<4x16xf32> -> vector<4x16xf32>
    %c0_31 = arith.constant 0 : index
    %c0_32 = arith.constant 0 : index
    %48 = vector.load %arg8[%c0_31, %c0_32] : memref<8x16xf32, #tpu.memory_space<vmem>>, vector<4x16xf32>
    tpu.vector_store %arg8[%c0_31, %c0_32], %47 {strides = array<i32>} : memref<8x16xf32, #tpu.memory_space<vmem>>, vector<4x16xf32>,
    %c4 = arith.constant 4 : index
    %c0_33 = arith.constant 0 : index
    %49 = vector.load %arg5[%c4, %c0_33] : memref<8x16xf32, #tpu.memory_space<vmem>>, vector<4x16xf32>
    %cst_34 = arith.constant dense<0.000000e+00> : vector<16x16xf32>
    %50 = tpu.matmul %49, %49, %cst_34 {dimension_numbers = #tpu.dot_dimension_numbers<[0], [0], [1], [1], [0, 1, 1, 1], [], []>} : vector<4x16xf32>, vector<4x16xf32>, vector<16x16xf32> -> vector<16x16xf32>
    %cst_35 = arith.constant 5.000000e-01 : f32
    %51 = vector.broadcast %cst_35 : f32 to vector<16x16xf32>
    %52 = arith.mulf %50, %51 : vector<16x16xf32>
    %cst_36 = arith.constant dense<0xFF800000> : vector<16xf32>
    %53 = vector.multi_reduction <maximumf>, %52, %cst_36 [1] : vector<16x16xf32> to vector<16xf32>
    %54 = vector.shape_cast %53 : vector<16xf32> to vector<16x1xf32>
    %55 = vector.broadcast %54 : vector<16x1xf32> to vector<16x16xf32>
    %56 = arith.subf %52, %55 : vector<16x16xf32>
    %57 = math.exp %56 : vector<16x16xf32>
    %cst_37 = arith.constant dense<0.000000e+00> : vector<16xf32>
    %58 = vector.multi_reduction <add>, %57, %cst_37 [1] : vector<16x16xf32> to vector<16xf32>
    %59 = vector.shape_cast %58 : vector<16xf32> to vector<16x1xf32>
    %60 = vector.broadcast %59 : vector<16x1xf32> to vector<16x16xf32>
    %61 = arith.divf %57, %60 : vector<16x16xf32>
    %cst_38 = arith.constant dense<0.000000e+00> : vector<4x16xf32>
    %62 = tpu.matmul %49, %61, %cst_38 {dimension_numbers = #tpu.dot_dimension_numbers<[1], [1], [0], [0], [0, 0, 1, 0], [], []>} : vector<4x16xf32>, vector<16x16xf32>, vector<4x16xf32> -> vector<4x16xf32>
    %c4_39 = arith.constant 4 : index
    %c0_40 = arith.constant 0 : index
    %63 = vector.load %arg7[%c4_39, %c0_40] : memref<8x16xf32, #tpu.memory_space<vmem>>, vector<4x16xf32>
    tpu.vector_store %arg7[%c4_39, %c0_40], %62 {strides = array<i32>} : memref<8x16xf32, #tpu.memory_space<vmem>>, vector<4x16xf32>,
    %c4_41 = arith.constant 4 : index
    %c0_42 = arith.constant 0 : index
    %64 = vector.load %arg6[%c4_41, %c0_42] : memref<8x16xf32, #tpu.memory_space<vmem>>, vector<4x16xf32>
    %cst_43 = arith.constant dense<0.000000e+00> : vector<4xf32>
    %65 = vector.multi_reduction <add>, %62, %cst_43 [1] : vector<4x16xf32> to vector<4xf32>
    %66 = vector.shape_cast %65 : vector<4xf32> to vector<4x1xf32>
    %cst_44 = arith.constant 1.600000e+01 : f32
    %67 = vector.broadcast %cst_44 : f32 to vector<4x1xf32>
    %68 = arith.divf %66, %67 : vector<4x1xf32>
    %69 = vector.broadcast %68 : vector<4x1xf32> to vector<4x16xf32>
    %70 = arith.addf %64, %69 : vector<4x16xf32>
    %cst_45 = arith.constant 5.000000e-01 : f32
    %71 = vector.broadcast %cst_45 : f32 to vector<4x16xf32>
    %72 = arith.mulf %71, %70 : vector<4x16xf32>
    %cst_46 = arith.constant dense<0.000000e+00> : vector<16x16xf32>
    %73 = tpu.matmul %72, %72, %cst_46 {dimension_numbers = #tpu.dot_dimension_numbers<[0], [0], [1], [1], [0, 1, 1, 1], [], []>} : vector<4x16xf32>, vector<4x16xf32>, vector<16x16xf32> -> vector<16x16xf32>
    %cst_47 = arith.constant 5.000000e-01 : f32
    %74 = vector.broadcast %cst_47 : f32 to vector<16x16xf32>
    %75 = arith.mulf %73, %74 : vector<16x16xf32>
    %cst_48 = arith.constant dense<0xFF800000> : vector<16xf32>
    %76 = vector.multi_reduction <maximumf>, %75, %cst_48 [1] : vector<16x16xf32> to vector<16xf32>
    %77 = vector.shape_cast %76 : vector<16xf32> to vector<16x1xf32>
    %78 = vector.broadcast %77 : vector<16x1xf32> to vector<16x16xf32>
    %79 = arith.subf %75, %78 : vector<16x16xf32>
    %80 = math.exp %79 : vector<16x16xf32>
    %cst_49 = arith.constant dense<0.000000e+00> : vector<16xf32>
    %81 = vector.multi_reduction <add>, %80, %cst_49 [1] : vector<16x16xf32> to vector<16xf32>
    %82 = vector.shape_cast %81 : vector<16xf32> to vector<16x1xf32>
    %83 = vector.broadcast %82 : vector<16x1xf32> to vector<16x16xf32>
    %84 = arith.divf %80, %83 : vector<16x16xf32>
    %cst_50 = arith.constant dense<0.000000e+00> : vector<4x16xf32>
    %85 = tpu.matmul %72, %84, %cst_50 {dimension_numbers = #tpu.dot_dimension_numbers<[1], [1], [0], [0], [0, 0, 1, 0], [], []>} : vector<4x16xf32>, vector<16x16xf32>, vector<4x16xf32> -> vector<4x16xf32>
    %c4_51 = arith.constant 4 : index
    %c0_52 = arith.constant 0 : index
    %86 = vector.load %arg8[%c4_51, %c0_52] : memref<8x16xf32, #tpu.memory_space<vmem>>, vector<4x16xf32>
    tpu.vector_store %arg8[%c4_51, %c0_52], %85 {strides = array<i32>} : memref<8x16xf32, #tpu.memory_space<vmem>>, vector<4x16xf32>,
    %c0_53 = arith.constant 0 : index
    %c0_54 = arith.constant 0 : index
    %87 = vector.load %arg7[%c0_53, %c0_54] : memref<8x16xf32, #tpu.memory_space<vmem>>, vector<8x16xf32>
    %cst_55 = arith.constant dense<0.000000e+00> : vector<8x256xf32>
    %88 = tpu.matmul %87, %0, %cst_55 {dimension_numbers = #tpu.dot_dimension_numbers<[1], [0], [0], [1], [0, 0, 1, 1], [], []>} : vector<8x16xf32>, vector<16x256xf32>, vector<8x256xf32> -> vector<8x256xf32>
    %c0_56 = arith.constant 0 : index
    %c0_57 = arith.constant 0 : index
    %89 = vector.load %arg8[%c0_56, %c0_57] : memref<8x16xf32, #tpu.memory_space<vmem>>, vector<8x16xf32>
    %cst_58 = arith.constant dense<0.000000e+00> : vector<8x256xf32>
    %90 = tpu.matmul %89, %1, %cst_58 {dimension_numbers = #tpu.dot_dimension_numbers<[1], [0], [0], [1], [0, 0, 1, 1], [], []>} : vector<8x16xf32>, vector<16x256xf32>, vector<8x256xf32> -> vector<8x256xf32>
    %c0_59 = arith.constant 0 : index
    %c0_60 = arith.constant 0 : index
    %91 = vector.load %arg1[%c0_59, %c0_60] : memref<8x256xf32, #tpu.memory_space<vmem>>, vector<8x256xf32>
    %cst_61 = arith.constant 2.500000e-01 : f32
    %92 = vector.broadcast %cst_61 : f32 to vector<8x256xf32>
    %93 = arith.mulf %92, %91 : vector<8x256xf32>
    %cst_62 = arith.constant 2.500000e-01 : f32
    %94 = vector.broadcast %cst_62 : f32 to vector<8x256xf32>
    %95 = arith.mulf %94, %88 : vector<8x256xf32>
    %96 = arith.addf %93, %95 : vector<8x256xf32>
    %cst_63 = arith.constant 5.000000e-01 : f32
    %97 = vector.broadcast %cst_63 : f32 to vector<8x256xf32>
    %98 = arith.mulf %97, %90 : vector<8x256xf32>
    %99 = arith.addf %96, %98 : vector<8x256xf32>
    %c0_64 = arith.constant 0 : index
    %c0_65 = arith.constant 0 : index
    %100 = vector.load %arg4[%c0_64, %c0_65] : memref<8x256xf32, #tpu.memory_space<vmem>>, vector<8x256xf32>
    tpu.vector_store %arg4[%c0_64, %c0_65], %99 {strides = array<i32>} : memref<8x256xf32, #tpu.memory_space<vmem>>, vector<8x256xf32>,
    return
  }
  func.func @transform_0(%arg0: i32) -> (i32, i32) {
    %c0_i32 = arith.constant 0 : i32
    %c0_i32_0 = arith.constant 0 : i32
    return %arg0, %c0_i32 : i32, i32
  }
  func.func @transform_1(%arg0: i32) -> (i32, i32) {
    %c0_i32 = arith.constant 0 : i32
    %c0_i32_0 = arith.constant 0 : i32
    %c0_i32_1 = arith.constant 0 : i32
    return %c0_i32, %c0_i32_0 : i32, i32
  }
  func.func @transform_2(%arg0: i32) -> (i32, i32) {
    %c0_i32 = arith.constant 0 : i32
    %c0_i32_0 = arith.constant 0 : i32
    %c0_i32_1 = arith.constant 0 : i32
    return %c0_i32, %c0_i32_0 : i32, i32
  }
  func.func @transform_3(%arg0: i32) -> (i32, i32) {
    %c0_i32 = arith.constant 0 : i32
    %c0_i32_0 = arith.constant 0 : i32
    return %arg0, %c0_i32 : i32, i32
  }
}

</mosaic_0001>

<bundles_post_ra>
// kernel: tpu_custom_call.1
= control target key start
LH: loop header
LB: loop body
LE: loop exit
PB: predicated region body
PF: predicated region fallthrough
CT: control target
= control target key end

     0   :  { %8 = vsyncpa [#allocation7], 0  ;;  %s1214_s0 = inlined_call_operand.hbm [shape: f32[8,256], index: 0, kind: input, shape index: {}]   ;;  %s1215_s1 = inlined_call_operand.hbm [shape: f32[16,256], index: 1, kind: input, shape index: {}]   ;;  %s1216_s2 = inlined_call_operand.hbm [shape: f32[16,256], index: 2, kind: input, shape index: {}]   ;;  %s1217_s3 = inlined_call_operand.hbm [shape: f32[8,256], index: 3, kind: output, shape index: {}]  }
   0x1   :  { %9 = vsyncpa [#allocation10], 0  ;;  %s26_s14 = sshll.u32 %s1215_s1, 4  ;;  %s27_s14 = int_to_ptr.hbm [resolvable:$true] %s26_s14 }
   0x2   :  { %10 = vsyncpa [#allocation8], 0  ;;  %s1045_s15 = smov [#allocation9]   ;;  %s16_s19 = sshll.u32 %s1214_s0, 4  ;;  %s17_s19 = int_to_ptr.hbm [resolvable:$true] %s16_s19 }
   0x3   :  { %s28_s16 = sshll.u32 %s1045_s15, 4  ;;  %s1046_s20 = smov 256   ;;  %s29_s16 = int_to_ptr.vmem [resolvable:$true] %s28_s16 }
   0x4   :  { %s1047_s21 = smov 16   ;;  %s1048_s22 = smov [#allocation6]  }
   0x5   :  { %34 = dma.hbm_to_vmem [thread:$0]  %s27_s14, 512, %s29_s16, [#allocation10], %s1046_s20, %s1046_s20, %s1047_s21  }
   0x6   :  { %s18_s23 = sshll.u32 %s1048_s22, 4  ;;  %s39_s26 = sshll.u32 %s1216_s2, 4  ;;  %s19_s23 = int_to_ptr.vmem [resolvable:$true] %s18_s23  ;;  %s40_s26 = int_to_ptr.hbm [resolvable:$true] %s39_s26 }
   0x7   :  { %21 = dma.hbm_to_vmem [thread:$0]  %s17_s19, 256, %s19_s23, [#allocation7]  }
   0x8   :  { %s1049_s1 = smov [#allocation11]  }
   0x9   :  { %s41_s27 = sshll.u32 %s1049_s1, 4  ;;  %s42_s27 = int_to_ptr.vmem [resolvable:$true] %s41_s27 }
   0xa   :  { %47 = dma.hbm_to_vmem [thread:$0]  %s40_s26, 512, %s42_s27, [#allocation10], %s1046_s20, %s1046_s20, %s1047_s21  }
   0xb   :  { %1039 = dma.done.wait [#allocation7], 256  }
   0xc   :  { %1040 = vsyncadd [#allocation7], 4294967040 }
   0xd   :  { %1041 = dma.done.wait [#allocation10], 1024  }
   0xe   :  { %1042 = vsyncadd [#allocation10], 4294966272  ;;  %v1081_v0 = vld [vmem:[#allocation9 + $0x10] sm:$0xff]  ;;  %v1083_v1 = vld [vmem:[#allocation9 + $0x18] sm:$0xff]  ;;  %vm111_vm0 = vcmask 130048   ;;  %vm195_vm1 = vcmask 1043456  }
   0xf   :  { %84 = vmatpush.xpose.msra.mxu0 %v1081_v0  ;;  %104 = vmatpush.xpose.msra.mxu1 %v1083_v1  ;;  %v1087_v2 = vld [vmem:[#allocation9] sm:$0xff]  ;;  %v1089_v3 = vld [vmem:[#allocation9 + $0x8] sm:$0xff]  ;;  %v1093_v4 = vld [vmem:[#allocation6] sm:$0xff]  ;;  %vm188_vm2 = vcmask 31744   ;;  %vm300_vm11 = vcmask 125952   ;;  %s1051_s0 = smov [#allocation12]  }
  0x10   :  { %v1095_v5 = vld [vmem:[#allocation6 + $0x8] sm:$0xff]  ;;  %v1111_v30 = vld [vmem:[#allocation11 + $0x10] sm:$0xff]  ;;  %v1117_v32 = vld [vmem:[#allocation11] sm:$0xff]  ;;  %s860_s2 = sshll.u32 %s1051_s0, 4  ;;  %s862_s30 = sshll.u32 %s1217_s3, 4  ;;  %s861_s2 = int_to_ptr.vmem [resolvable:$true] %s860_s2  ;;  %s863_s30 = int_to_ptr.hbm [resolvable:$true] %s862_s30 }
  0x11   :  { %v1113_v31 = vld [vmem:[#allocation11 + $0x18] sm:$0xff]  ;;  %127 = vmatpush.xpose.msra.mxu2 %v1111_v30  ;;  %v1119_v33 = vld [vmem:[#allocation11 + $0x8] sm:$0xff] }
  0x12   :  { %147 = vmatpush.xpose.msra.mxu3 %v1113_v31 }
  0x13   :  { %85 = vmatpush.xpose.msra.mxu0 %v1087_v2  ;;  %105 = vmatpush.xpose.msra.mxu1 %v1089_v3 }
  0x15   :  { %128 = vmatpush.xpose.msra.mxu2 %v1117_v32 }
  0x16   :  { %86 = vmatmul.f32.vlgmr.msra.gmra.mxu0 %v1093_v4  ;;  %106 = vmatmul.f32.vlgmr.msra.gmra.mxu1 %v1095_v5 }
  0x17   :  { %148 = vmatpush.xpose.msra.mxu3 %v1119_v33 }
  0x18   :  { %129 = vmatmul.f32.vlgmr.msra.gmra.mxu2 %v1093_v4 }
  0x1a   :  { %149 = vmatmul.f32.vlgmr.msra.gmra.mxu3 %v1095_v5 }
  0x93   :  { %v87_v6 = vpop.f32.mrf.mxu0  ;;  %v107_v7 = vpop.f32.mrf.mxu1 }
  0x94   :  { %v108_v8 = vadd.f32 %v107_v7, %v87_v6  ;;  %v1050_v6 = vmov 16.0  }
  0x96   :  { %v110_v9 = vmul.f32 0.0625, %v108_v8 }
  0x98   :  { %112 = vst.msk [vmem:[#allocation2] sm:$0xff] %vm111_vm0, %v110_v9 }
  0x9b   :  { %v130_v60 = vpop.f32.mrf.mxu2 }
  0x9d   :  { %v150_v61 = vpop.f32.mrf.mxu3 }
  0x9e   :  { %v151_v62 = vadd.f32 %v150_v61, %v130_v60 }
  0x9f   :  { %v1100_v10 = vld [vmem:[#allocation2] sm:$0xf]  ;;  %v1127_v57 = vld [vmem:[#allocation2 + $0x4] sm:$0xf] }
  0xa0   :  { %156 = vxpose.xlu0.b32.start.end [1/1] (short) (narrow) %v1100_v10, 16  ;;  %873 = vmatpush.msk.msrb.mxu0 %vm195_vm1, %v1100_v10  ;;  %v153_v63 = vmul.f32 0.0625, %v151_v62 }
  0xa2   :  { %154 = vst.msk [vmem:[#allocation3] sm:$0xff] %vm111_vm0, %v153_v63 }
 0x144   :  { %v172_v11 = vpop.trf.xlu0 }
 0x145   :  { %874 = vmatmul.msk.f32.vlgmr.msrb.gmra.mxu0 %vm188_vm2, %v172_v11  ;;  %v302_v11 = vld [vmem:[#allocation3] sm:$0xf] }
 0x14c   :  { %v173_v12 = vpop.trf.xlu0 }
 0x14d   :  { %875 = vmatmul.msk.f32.gmra.mxu0 %vm188_vm2, %v173_v12 }
 0x1c2   :  { %v216_v13 = vpop.f32.mrf.mxu0 }
 0x1c3   :  { %v222_v14 = vmul.f32 0.5, %v216_v13 }
 0x1c5   :  { %v224_v15 = vsel %vm111_vm0, %v222_v14, -inf }
 0x1c6   :  { %225 = vmax.xlane.f32.xlu1 %v224_v15 }
 0x1ca   :  { %v219_v16 = vpop.f32.mrf.mxu0 }
 0x1cb   :  { %v223_v17 = vmul.f32 0.5, %v219_v16 }
 0x1cd   :  { %v227_v18 = vsel %vm111_vm0, %v223_v17, -inf }
 0x1ce   :  { %228 = vmax.xlane.f32.xlu0 %v227_v18 }
 0x239   :  { %v226_v19 = vpop.xlane.xlu1 %225 }
 0x23a   :  { %v230_v20 = vsub.f32 %v222_v14, %v226_v19 }
 0x23c   :  { %v232_v21 = vmul.f32 1.442695, %v230_v20 }
 0x23e   :  { %909 = vpow2.f32 %v232_v21 }
 0x241   :  { %v229_v22 = vpop.xlane.xlu0 %228 }
 0x242   :  { %v231_v23 = vsub.f32 %v223_v17, %v229_v22 }
 0x244   :  { %v910_v24 = vpop.eup %909  ;;  %v234_v25 = vmul.f32 1.442695, %v231_v23 }
 0x245   :  { %v236_v26 = vsel %vm111_vm0, %v910_v24, 0.0 }
 0x246   :  { %911 = vpow2.f32 %v234_v25  ;;  %237 = vadd.xlane.f32.xlu2 %v236_v26 }
 0x24c   :  { %v912_v27 = vpop.eup %911 }
 0x24d   :  { %v239_v28 = vsel %vm111_vm0, %v912_v27, 0.0 }
 0x24e   :  { %240 = vadd.xlane.f32.xlu1 %v239_v28 }
 0x2b9   :  { %v238_v29 = vpop.xlane.xlu2 %237 }
 0x2ba   :  { %913 = vrcp.f32 %v238_v29  ;;  %vm247_vm5 = vweird.f32 %v238_v29  ;;  %v253_v46 = vand.u32 2147483648, %v238_v29  ;;  %v251_v48 = vand.u32 2147483647, %v238_v29 }
 0x2bc   :  { %v254_v52 = vor.u32 1.1754944e-38, %v253_v46  ;;  %vm252_vm10 = vcmp.eq.f32.partialorder %v251_v48, 8.507059e+37 }
 0x2c0   :  { %v914_v34 = vpop.eup %913 }
 0x2c1   :  { %v243_v35 = vmul.f32 %v914_v34, %v238_v29  ;;  %v241_v36 = vpop.xlane.xlu1 %240  ;;  %vm248_vm3 = vweird.f32 %v914_v34 }
 0x2c2   :  { %915 = vrcp.f32 %v241_v36  ;;  %v268_v42 = vand.u32 2147483648, %v241_v36  ;;  %v266_v44 = vand.u32 2147483647, %v241_v36  ;;  %vm262_vm6 = vweird.f32 %v241_v36  ;;  %vm249_vm7 = vmor %vm247_vm5, %vm248_vm3 }
 0x2c3   :  { %v244_v37 = vsub.f32 1.0, %v243_v35  ;;  %917 = vrcp.f32 %v1050_v6 }
 0x2c4   :  { %v269_v49 = vor.u32 1.1754944e-38, %v268_v42  ;;  %vm267_vm9 = vcmp.eq.f32.partialorder %v266_v44, 8.507059e+37 }
 0x2c5   :  { %v245_v39 = vmul.f32 %v914_v34, %v244_v37 }
 0x2c7   :  { %v246_v45 = vadd.f32 %v914_v34, %v245_v39 }
 0x2c8   :  { %v916_v38 = vpop.eup %915 }
 0x2c9   :  { %v258_v40 = vmul.f32 %v916_v38, %v241_v36  ;;  %vm263_vm4 = vweird.f32 %v916_v38  ;;  %v250_v51 = vsel %vm249_vm7, %v914_v34, %v246_v45 }
 0x2ca   :  { %vm264_vm8 = vmor %vm262_vm6, %vm263_vm4  ;;  %v255_v55 = vsel %vm252_vm10, %v254_v52, %v250_v51 }
 0x2cb   :  { %v259_v41 = vsub.f32 1.0, %v258_v40  ;;  %v256_v56 = vmul.f32 %v910_v24, %v255_v55 }
 0x2cd   :  { %v260_v43 = vmul.f32 %v916_v38, %v259_v41 }
 0x2cf   :  { %v261_v47 = vadd.f32 %v916_v38, %v260_v43 }
 0x2d1   :  { %v265_v50 = vsel %vm264_vm8, %v916_v38, %v261_v47 }
 0x2d2   :  { %v270_v53 = vsel %vm267_vm9, %v269_v49, %v265_v50 }
 0x2d3   :  { %v271_v54 = vmul.f32 %v912_v27, %v270_v53 }
 0x2d5   :  { %876 = vmatpush.xpose.msk.msrb.mxu1 %vm111_vm0, %v271_v54 }
 0x2d9   :  { %877 = vmatpush.xpose.msk.msrb.mxu1 %vm111_vm0, %v256_v56 }
 0x2dc   :  { %878 = vmatmul.msk.f32.vlgmr.msrb.gmra.mxu1 %vm111_vm0, %v1100_v10 }
 0x2dd   :  { %885 = vmatpush.msk.msra.mxu1 %vm195_vm1, %v1127_v57 }
 0x2df   :  { %791 = vmatpush.msrb.mxu1 %v1083_v1  ;;  %v918_v1 = vpop.eup %917 }
 0x2e0   :  { %v307_v7 = vmul.f32 16.0, %v918_v1  ;;  %vm311_vm12 = vweird.f32 %v918_v1 }
 0x2e1   :  { %792 = vmatpush.msrb.mxu1 %v1089_v3 }
 0x2e2   :  { %v308_v3 = vsub.f32 1.0, %v307_v7 }
 0x2e4   :  { %v309_v8 = vmul.f32 %v918_v1, %v308_v3 }
 0x2e6   :  { %v310_v9 = vadd.f32 %v918_v1, %v309_v8 }
 0x2e8   :  { %v1139_v10 = vsel %vm311_vm12, %v918_v1, %v310_v9 }
 0x359   :  { %v297_v58 = vpop.f32.mrf.mxu1 }
 0x35a   :  { %301 = vst.msk [vmem:[#allocation4] sm:$0xf] %vm300_vm11, %v297_v58  ;;  %v303_v59 = vsel %vm300_vm11, %v297_v58, 0.0 }
 0x35b   :  { %304 = vadd.xlane.f32.xlu2 %v303_v59 }
 0x384   :  { %460 = vxpose.xlu2.b32.start.end [1/1] (short) (narrow) %v1127_v57, 16 }
 0x3ce   :  { %v305_v12 = vpop.xlane.xlu2 %304 }
 0x3cf   :  { %v313_v13 = vmul.f32 %v1139_v10, %v305_v12 }
 0x3d1   :  { %v314_v14 = vadd.f32 %v313_v13, %v302_v11 }
 0x3d3   :  { %v1142_v15 = vmul.f32 0.5, %v314_v14 }
 0x3d5   :  { %316 = vxpose.xlu1.b32.start.end [1/1] (short) (narrow) %v1142_v15, 16  ;;  %879 = vmatpush.msk.msrb.mxu2 %vm195_vm1, %v1142_v15 }
 0x41d   :  { %v476_v16 = vpop.trf.xlu2 }
 0x41e   :  { %886 = vmatmul.msk.f32.vlgmr.msra.gmra.mxu1 %vm188_vm2, %v476_v16 }
 0x425   :  { %v477_v17 = vpop.trf.xlu2 }
 0x426   :  { %887 = vmatmul.msk.f32.gmra.mxu1 %vm188_vm2, %v477_v17 }
 0x479   :  { %v332_v18 = vpop.trf.xlu1 }
 0x47a   :  { %880 = vmatmul.msk.f32.vlgmr.msrb.gmra.mxu2 %vm188_vm2, %v332_v18 }
 0x481   :  { %v333_v19 = vpop.trf.xlu1 }
 0x482   :  { %881 = vmatmul.msk.f32.gmra.mxu2 %vm188_vm2, %v333_v19 }
 0x49b   :  { %v518_v20 = vpop.f32.mrf.mxu1 }
 0x49c   :  { %v524_v24 = vmul.f32 0.5, %v518_v20 }
 0x49e   :  { %v526_v25 = vsel %vm111_vm0, %v524_v24, -inf }
 0x4a3   :  { %v521_v21 = vpop.f32.mrf.mxu1 }
 0x4a4   :  { %v525_v22 = vmul.f32 0.5, %v521_v21 }
 0x4a6   :  { %v529_v23 = vsel %vm111_vm0, %v525_v22, -inf }
 0x4a7   :  { %530 = vmax.xlane.f32.xlu0 %v529_v23 }
 0x4af   :  { %527 = vmax.xlane.f32.xlu0 %v526_v25 }
 0x4fd   :  { %v374_v26 = vpop.f32.mrf.mxu2 }
 0x4fe   :  { %v380_v27 = vmul.f32 0.5, %v374_v26 }
 0x500   :  { %v382_v28 = vsel %vm111_vm0, %v380_v27, -inf }
 0x501   :  { %383 = vmax.xlane.f32.xlu1 %v382_v28 }
 0x505   :  { %v377_v29 = vpop.f32.mrf.mxu2 }
 0x506   :  { %v381_v34 = vmul.f32 0.5, %v377_v29 }
 0x508   :  { %v385_v35 = vsel %vm111_vm0, %v381_v34, -inf }
 0x509   :  { %386 = vmax.xlane.f32.xlu2 %v385_v35 }
 0x51a   :  { %v531_v39 = vpop.xlane.xlu0 %530 }
 0x51b   :  { %v533_v43 = vsub.f32 %v525_v22, %v531_v39 }
 0x51d   :  { %v536_v46 = vmul.f32 1.442695, %v533_v43 }
 0x522   :  { %v528_v47 = vpop.xlane.xlu0 %527 }
 0x523   :  { %v532_v49 = vsub.f32 %v524_v24, %v528_v47 }
 0x525   :  { %v534_v51 = vmul.f32 1.442695, %v532_v49 }
 0x574   :  { %v384_v36 = vpop.xlane.xlu1 %383 }
 0x575   :  { %v388_v37 = vsub.f32 %v380_v27, %v384_v36 }
 0x577   :  { %v390_v38 = vmul.f32 1.442695, %v388_v37 }
 0x579   :  { %919 = vpow2.f32 %v390_v38 }
 0x57c   :  { %v387_v40 = vpop.xlane.xlu2 %386 }
 0x57d   :  { %v389_v41 = vsub.f32 %v381_v34, %v387_v40 }
 0x57f   :  { %v1155_v42 = vpop.eup %919  ;;  %v392_v44 = vmul.f32 1.442695, %v389_v41 }
 0x580   :  { %v394_v45 = vsel %vm111_vm0, %v1155_v42, 0.0 }
 0x581   :  { %921 = vpow2.f32 %v392_v44  ;;  %395 = vadd.xlane.f32.xlu0 %v394_v45 }
 0x582   :  { %923 = vpow2.f32 %v536_v46 }
 0x583   :  { %925 = vpow2.f32 %v534_v51 }
 0x587   :  { %v922_v48 = vpop.eup %921 }
 0x588   :  { %v397_v50 = vsel %vm111_vm0, %v922_v48, 0.0  ;;  %v1160_v52 = vpop.eup %923 }
 0x589   :  { %398 = vadd.xlane.f32.xlu0 %v397_v50  ;;  %v541_v53 = vsel %vm111_vm0, %v1160_v52, 0.0  ;;  %v1164_v54 = vpop.eup %925 }
 0x58a   :  { %v538_v55 = vsel %vm111_vm0, %v1164_v54, 0.0 }
 0x591   :  { %542 = vadd.xlane.f32.xlu0 %v541_v53 }
 0x599   :  { %539 = vadd.xlane.f32.xlu0 %v538_v55 }
 0x5f4   :  { %v396_v56 = vpop.xlane.xlu0 %395 }
 0x5f5   :  { %927 = vrcp.f32 %v396_v56  ;;  %v411_v12 = vand.u32 2147483648, %v396_v56  ;;  %vm405_vm3 = vweird.f32 %v396_v56  ;;  %v409_v16 = vand.u32 2147483647, %v396_v56 }
 0x5f7   :  { %v412_v22 = vor.u32 1.1754944e-38, %v411_v12  ;;  %vm410_vm7 = vcmp.eq.f32.partialorder %v409_v16, 8.507059e+37 }
 0x5fb   :  { %v928_v58 = vpop.eup %927 }
 0x5fc   :  { %v399_v59 = vpop.xlane.xlu0 %398  ;;  %v401_v60 = vmul.f32 %v928_v58, %v396_v56  ;;  %vm406_vm14 = vweird.f32 %v928_v58 }
 0x5fd   :  { %929 = vrcp.f32 %v399_v59  ;;  %v426_v8 = vand.u32 2147483648, %v399_v59  ;;  %v424_v9 = vand.u32 2147483647, %v399_v59  ;;  %vm420_vm15 = vweird.f32 %v399_v59  ;;  %vm407_vm5 = vmor %vm405_vm3, %vm406_vm14 }
 0x5fe   :  { %v402_v61 = vsub.f32 1.0, %v401_v60 }
 0x5ff   :  { %v427_v17 = vor.u32 1.1754944e-38, %v426_v8  ;;  %vm425_vm6 = vcmp.eq.f32.partialorder %v424_v9, 8.507059e+37 }
 0x600   :  { %v403_v1 = vmul.f32 %v928_v58, %v402_v61 }
 0x602   :  { %v404_v11 = vadd.f32 %v928_v58, %v403_v1 }
 0x603   :  { %v930_v62 = vpop.eup %929 }
 0x604   :  { %v416_v63 = vmul.f32 %v930_v62, %v399_v59  ;;  %v543_v6 = vpop.xlane.xlu0 %542  ;;  %vm421_vm13 = vweird.f32 %v930_v62  ;;  %v408_v21 = vsel %vm407_vm5, %v928_v58, %v404_v11 }
 0x605   :  { %931 = vrcp.f32 %v543_v6  ;;  %vm422_vm4 = vmor %vm420_vm15, %vm421_vm13  ;;  %v570_v25 = vand.u32 2147483648, %v543_v6  ;;  %v568_v28 = vand.u32 2147483647, %v543_v6  ;;  %v413_v29 = vsel %vm410_vm7, %v412_v22, %v408_v21 }
 0x606   :  { %v417_v7 = vsub.f32 1.0, %v416_v63  ;;  %vm564_vm9 = vweird.f32 %v543_v6  ;;  %v414_v37 = vmul.f32 %v1155_v42, %v413_v29 }
 0x607   :  { %v571_v36 = vor.u32 1.1754944e-38, %v570_v25  ;;  %vm569_vm12 = vcmp.eq.f32.partialorder %v568_v28, 8.507059e+37 }
 0x608   :  { %v418_v3 = vmul.f32 %v930_v62, %v417_v7 }
 0x60a   :  { %v419_v13 = vadd.f32 %v930_v62, %v418_v3 }
 0x60b   :  { %v932_v14 = vpop.eup %931 }
 0x60c   :  { %v560_v18 = vmul.f32 %v932_v14, %v543_v6  ;;  %v540_v19 = vpop.xlane.xlu0 %539  ;;  %v423_v20 = vsel %vm422_vm4, %v930_v62, %v419_v13  ;;  %vm565_vm8 = vweird.f32 %v932_v14 }
 0x60d   :  { %933 = vrcp.f32 %v540_v19  ;;  %v428_v24 = vsel %vm425_vm6, %v427_v17, %v423_v20  ;;  %vm566_vm10 = vmor %vm564_vm9, %vm565_vm8  ;;  %v555_v44 = vand.u32 2147483648, %v540_v19  ;;  %v553_v46 = vand.u32 2147483647, %v540_v19 }
 0x60e   :  { %v561_v23 = vsub.f32 1.0, %v560_v18  ;;  %v429_v26 = vmul.f32 %v922_v48, %v428_v24  ;;  %vm549_vm14 = vweird.f32 %v540_v19 }
 0x60f   :  { %v556_v42 = vor.u32 1.1754944e-38, %v555_v44  ;;  %vm554_vm3 = vcmp.eq.f32.partialorder %v553_v46, 8.507059e+37 }
 0x610   :  { %v562_v27 = vmul.f32 %v932_v14, %v561_v23  ;;  %882 = vmatpush.xpose.msk.msrb.mxu3 %vm111_vm0, %v429_v26 }
 0x612   :  { %v563_v34 = vadd.f32 %v932_v14, %v562_v27 }
 0x613   :  { %v934_v35 = vpop.eup %933 }
 0x614   :  { %v567_v38 = vsel %vm566_vm10, %v932_v14, %v563_v34  ;;  %v545_v39 = vmul.f32 %v934_v35, %v540_v19  ;;  %883 = vmatpush.xpose.msk.msrb.mxu3 %vm111_vm0, %v414_v37  ;;  %vm550_vm13 = vweird.f32 %v934_v35 }
 0x615   :  { %v572_v40 = vsel %vm569_vm12, %v571_v36, %v567_v38  ;;  %vm551_vm15 = vmor %vm549_vm14, %vm550_vm13 }
 0x616   :  { %v546_v41 = vsub.f32 1.0, %v545_v39  ;;  %v573_v43 = vmul.f32 %v1160_v52, %v572_v40 }
 0x617   :  { %884 = vmatmul.msk.f32.vlgmr.msrb.gmra.mxu3 %vm111_vm0, %v1142_v15 }
 0x618   :  { %v547_v45 = vmul.f32 %v934_v35, %v546_v41  ;;  %888 = vmatpush.xpose.msk.msra.mxu3 %vm111_vm0, %v573_v43 }
 0x61a   :  { %v548_v47 = vadd.f32 %v934_v35, %v547_v45 }
 0x61c   :  { %v552_v48 = vsel %vm551_vm15, %v934_v35, %v548_v47  ;;  %v844_v47 = vmul.f32 0.25, %v1095_v5 }
 0x61d   :  { %v557_v49 = vsel %vm554_vm3, %v556_v42, %v552_v48 }
 0x61e   :  { %v558_v50 = vmul.f32 %v1164_v54, %v557_v49 }
 0x620   :  { %889 = vmatpush.xpose.msk.msra.mxu3 %vm111_vm0, %v558_v50 }
 0x623   :  { %890 = vmatmul.msk.f32.vlgmr.msra.gmra.mxu3 %vm111_vm0, %v1127_v57 }
 0x624   :  { %771 = vmatpush.msrb.mxu3 %v1081_v0 }
 0x626   :  { %772 = vmatpush.msrb.mxu3 %v1087_v2 }
 0x628   :  { %835 = vmatpush.msra.mxu3 %v1113_v31  ;;  %v603_v31 = vld [vmem:[#allocation3 + $0x4] sm:$0xf] }
 0x62a   :  { %836 = vmatpush.msra.mxu3 %v1119_v33 }
 0x69a   :  { %v455_v15 = vpop.f32.mrf.mxu3 }
 0x69b   :  { %458 = vst.msk [vmem:[#allocation5] sm:$0xf] %vm300_vm11, %v455_v15 }
 0x6a6   :  { %v599_v51 = vpop.f32.mrf.mxu3 }
 0x6a7   :  { %602 = vst.msk [vmem:[#allocation4 + $0x4] sm:$0xf] %vm300_vm11, %v599_v51  ;;  %v604_v52 = vsel %vm300_vm11, %v599_v51, 0.0 }
 0x6a8   :  { %605 = vadd.xlane.f32.xlu0 %v604_v52 }
 0x6ae   :  { %v753_v53 = vld [vmem:[#allocation4] sm:$0xff] }
 0x6af   :  { %897 = vmatmul.msk.f32.vlgmr.msrb.gmra.mxu3 %vm111_vm0, %v753_v53  ;;  %898 = vmatmul.msk.f32.vlgmr.msrb.gmra.mxu1 %vm111_vm0, %v753_v53 }
 0x71b   :  { %v606_v0 = vpop.xlane.xlu0 %605 }
 0x71c   :  { %v607_v2 = vmul.f32 %v606_v0, %v1139_v10 }
 0x71e   :  { %v608_v57 = vadd.f32 %v607_v2, %v603_v31 }
 0x720   :  { %v1189_v33 = vmul.f32 0.5, %v608_v57 }
 0x722   :  { %610 = vxpose.xlu1.b32.start.end [1/1] (short) (narrow) %v1189_v33, 16  ;;  %891 = vmatpush.msk.msra.mxu0 %vm195_vm1, %v1189_v33 }
 0x72c   :  { %v794_v46 = vpop.f32.mrf.mxu1 }
 0x72d   :  { %v846_v42 = vmul.f32 0.25, %v794_v46 }
 0x72f   :  { %v848_v15 = vadd.f32 %v846_v42, %v844_v47 }
 0x732   :  { %v774_v45 = vpop.f32.mrf.mxu3 }
 0x733   :  { %v845_v48 = vmul.f32 0.25, %v774_v45 }
 0x7c6   :  { %v626_v54 = vpop.trf.xlu1 }
 0x7c7   :  { %892 = vmatmul.msk.f32.vlgmr.msra.gmra.mxu0 %vm188_vm2, %v626_v54 }
 0x7ce   :  { %v627_v55 = vpop.trf.xlu1 }
 0x7cf   :  { %893 = vmatmul.msk.f32.gmra.mxu0 %vm188_vm2, %v627_v55 }
 0x844   :  { %v668_v56 = vpop.f32.mrf.mxu0 }
 0x845   :  { %v674_v58 = vmul.f32 0.5, %v668_v56 }
 0x847   :  { %v676_v59 = vsel %vm111_vm0, %v674_v58, -inf }
 0x848   :  { %677 = vmax.xlane.f32.xlu0 %v676_v59 }
 0x84c   :  { %v671_v10 = vpop.f32.mrf.mxu0 }
 0x84d   :  { %v675_v60 = vmul.f32 0.5, %v671_v10 }
 0x84f   :  { %v679_v61 = vsel %vm111_vm0, %v675_v60, -inf }
 0x850   :  { %680 = vmax.xlane.f32.xlu2 %v679_v61 }
 0x8bb   :  { %v678_v62 = vpop.xlane.xlu0 %677 }
 0x8bc   :  { %v682_v63 = vsub.f32 %v674_v58, %v678_v62 }
 0x8be   :  { %v684_v6 = vmul.f32 1.442695, %v682_v63 }
 0x8c0   :  { %935 = vpow2.f32 %v684_v6 }
 0x8c3   :  { %v681_v1 = vpop.xlane.xlu2 %680 }
 0x8c4   :  { %v683_v7 = vsub.f32 %v675_v60, %v681_v1 }
 0x8c6   :  { %v936_v3 = vpop.eup %935  ;;  %v686_v8 = vmul.f32 1.442695, %v683_v7 }
 0x8c7   :  { %v688_v9 = vsel %vm111_vm0, %v936_v3, 0.0 }
 0x8c8   :  { %937 = vpow2.f32 %v686_v8  ;;  %689 = vadd.xlane.f32.xlu0 %v688_v9 }
 0x8ce   :  { %v938_v11 = vpop.eup %937 }
 0x8cf   :  { %v691_v12 = vsel %vm111_vm0, %v938_v11, 0.0 }
 0x8d0   :  { %692 = vadd.xlane.f32.xlu2 %v691_v12 }
 0x93b   :  { %v690_v13 = vpop.xlane.xlu0 %689 }
 0x93c   :  { %939 = vrcp.f32 %v690_v13  ;;  %vm699_vm4 = vweird.f32 %v690_v13  ;;  %v705_v27 = vand.u32 2147483648, %v690_v13  ;;  %v703_v28 = vand.u32 2147483647, %v690_v13 }
 0x93e   :  { %v706_v37 = vor.u32 1.1754944e-38, %v705_v27  ;;  %vm704_vm9 = vcmp.eq.f32.partialorder %v703_v28, 8.507059e+37 }
 0x942   :  { %v940_v14 = vpop.eup %939 }
 0x943   :  { %v695_v16 = vmul.f32 %v940_v14, %v690_v13  ;;  %v693_v17 = vpop.xlane.xlu2 %692  ;;  %vm700_vm1 = vweird.f32 %v940_v14 }
 0x944   :  { %941 = vrcp.f32 %v693_v17  ;;  %v720_v23 = vand.u32 2147483648, %v693_v17  ;;  %v718_v26 = vand.u32 2147483647, %v693_v17  ;;  %vm701_vm5 = vmor %vm699_vm4, %vm700_vm1  ;;  %vm714_vm6 = vweird.f32 %v693_v17 }
 0x945   :  { %v696_v18 = vsub.f32 1.0, %v695_v16 }
 0x946   :  { %v721_v34 = vor.u32 1.1754944e-38, %v720_v23  ;;  %vm719_vm8 = vcmp.eq.f32.partialorder %v718_v26, 8.507059e+37 }
 0x947   :  { %v697_v20 = vmul.f32 %v940_v14, %v696_v18 }
 0x949   :  { %v698_v24 = vadd.f32 %v940_v14, %v697_v20 }
 0x94a   :  { %v942_v19 = vpop.eup %941 }
 0x94b   :  { %v710_v21 = vmul.f32 %v942_v19, %v693_v17  ;;  %vm715_vm2 = vweird.f32 %v942_v19  ;;  %v702_v35 = vsel %vm701_vm5, %v940_v14, %v698_v24 }
 0x94c   :  { %vm716_vm7 = vmor %vm714_vm6, %vm715_vm2  ;;  %v707_v40 = vsel %vm704_vm9, %v706_v37, %v702_v35 }
 0x94d   :  { %v711_v22 = vsub.f32 1.0, %v710_v21  ;;  %v708_v41 = vmul.f32 %v936_v3, %v707_v40 }
 0x94f   :  { %v712_v25 = vmul.f32 %v942_v19, %v711_v22 }
 0x951   :  { %v713_v29 = vadd.f32 %v942_v19, %v712_v25 }
 0x953   :  { %v717_v36 = vsel %vm716_vm7, %v942_v19, %v713_v29 }
 0x954   :  { %v722_v38 = vsel %vm719_vm8, %v721_v34, %v717_v36 }
 0x955   :  { %v723_v39 = vmul.f32 %v938_v11, %v722_v38 }
 0x957   :  { %894 = vmatpush.xpose.msk.msra.mxu2 %vm111_vm0, %v723_v39 }
 0x95b   :  { %895 = vmatpush.xpose.msk.msra.mxu2 %vm111_vm0, %v708_v41 }
 0x95e   :  { %896 = vmatmul.msk.f32.vlgmr.msra.gmra.mxu2 %vm111_vm0, %v1189_v33 }
 0x95f   :  { %815 = vmatpush.msrb.mxu2 %v1111_v30  ;;  %v843_v30 = vmul.f32 0.25, %v1093_v4 }
 0x961   :  { %816 = vmatpush.msrb.mxu2 %v1117_v32  ;;  %v847_v32 = vadd.f32 %v845_v48, %v843_v30 }
 0x9e1   :  { %v749_v43 = vpop.f32.mrf.mxu2 }
 0x9e2   :  { %752 = vst.msk [vmem:[#allocation5 + $0x4] sm:$0xf] %vm300_vm11, %v749_v43 }
 0x9e9   :  { %v797_v44 = vld [vmem:[#allocation5] sm:$0xff] }
 0x9ea   :  { %899 = vmatmul.msk.f32.vlgmr.msrb.gmra.mxu2 %vm111_vm0, %v797_v44  ;;  %900 = vmatmul.msk.f32.vlgmr.msra.gmra.mxu3 %vm111_vm0, %v797_v44 }
 0xa6d   :  { %v818_v49 = vpop.f32.mrf.mxu2  ;;  %v838_v50 = vpop.f32.mrf.mxu3 }
 0xa6e   :  { %v849_v51 = vmul.f32 0.5, %v818_v49  ;;  %v850_v52 = vmul.f32 0.5, %v838_v50 }
 0xa70   :  { %v851_v53 = vadd.f32 %v849_v51, %v847_v32  ;;  %v852_v0 = vadd.f32 %v850_v52, %v848_v15 }
 0xa72   :  { %853 = vst [vmem:[#allocation12] sm:$0xff] %v851_v53 }
 0xa73   :  { %854 = vst [vmem:[#allocation12 + $0x8] sm:$0xff] %v852_v0 }
 0xa74   :  { %865 = dma.vmem_to_hbm [thread:$0]  %s861_s2, 256, %s863_s30, [#allocation8]  }
 0xa75   :  { %1043 = dma.done.wait [#allocation8], 256  }
 0xa76   :  { %1044 = vsyncadd [#allocation8], 4294967040 }
 0xa77   :  { %870 = vsyncpa [#allocation7], 1 }
 0xa78   :  { %871 = vsyncpa [#allocation10], 1 }
 0xa79   :  { %872 = vsyncpa [#allocation8], 1 }

</bundles_post_ra>
